<compile_context>
chip_gen: v7x
topology: tpu7x:2x2x1
jax: 0.10.0
libtpu: 0.0.40
codegen_flags: <defaults>
</compile_context>

<pallas_src>
import math

import jax
import jax.numpy as jnp
from jax.experimental import pallas as pl
from jax.experimental.pallas import tpu as pltpu

LANE = 128


def _round_up(v, m=LANE):
    return -(-v // m) * m


def _sigmoid_eup(g):
    # logistic via EUP exp + approximate reciprocal (keeps VPU slots free).
    # The clamp keeps exp() finite for very negative gates.
    z = jnp.exp(-jnp.maximum(g, -30.0))
    return pl.reciprocal(1.0 + z, approx=True)


# ---------------------------------------------------------------------------
# Fused kernel: conv1+GLU -> conv2+GLU -> PE add -> Linear, one batch row per
# grid step.  Static sizes are closed over.  All channel dims are 128-aligned.
# ---------------------------------------------------------------------------
def _make_fused_kernel(Cp, C1hp, Hp, T1e, T1o, T2):
    tail_zero = T1e > T1o            # static: conv1 produced an odd frame count

    def kernel(x4_ref, w1_ref, b1_ref, w2_ref, b2_ref, pe_ref, wl_ref, bl_ref,
               o_ref, y1o_sc):
        f32, bf16 = jnp.float32, jnp.bfloat16
        xv = x4_ref[0]                               # (R_x4, 4*Cp) bf16
        w1 = w1_ref[...]                             # (3*Cp, 2*C1hp) bf16
        b1 = b1_ref[...]                             # (1, 2*C1hp) f32

        # ---- conv1 + GLU, EVEN outputs: one fused [value|gate] matmul over a
        #      lane-aligned contiguous [0:3*Cp] tap slice ---------------------
        acc = jnp.dot(xv[0:T1e, 0:3 * Cp], w1, preferred_element_type=f32) + b1
        y1e = (acc[:, :C1hp] * _sigmoid_eup(acc[:, C1hp:])).astype(bf16)

        # ---- conv1 + GLU, ODD outputs: two accumulating matmuls (taps 0+1
        #      from row r lanes [2Cp:4Cp], tap 2 from row r+1 lanes [0:Cp]) ---
        acc = (jnp.dot(xv[0:T1o, 2 * Cp:4 * Cp], w1[0:2 * Cp],
                       preferred_element_type=f32)
               + jnp.dot(xv[1:T1o + 1, 0:Cp], w1[2 * Cp:3 * Cp],
                         preferred_element_type=f32)
               + b1)
        y1o = (acc[:, :C1hp] * _sigmoid_eup(acc[:, C1hp:])).astype(bf16)

        # ---- stage the odd stream with its conv zero-padding rows so conv2's
        #      stride-2 neighbour taps become plain sublane slices ------------
        y1o_sc[0:1, :] = jnp.zeros((1, C1hp), bf16)
        if tail_zero:
            y1o_sc[T2:T2 + 1, :] = jnp.zeros((1, C1hp), bf16)
        y1o_sc[1:T1o + 1, :] = y1o

        # ---- conv2 + GLU: three accumulating matmuls (no im2col slab) -------
        w2 = w2_ref[...]                             # (3*C1hp, 2*Hp) bf16
        acc = jnp.dot(y1e, w2[C1hp:2 * C1hp], preferred_element_type=f32)
        acc = acc + jnp.dot(y1o_sc[0:T2, :], w2[0:C1hp],
                            preferred_element_type=f32)
        acc = acc + jnp.dot(y1o_sc[1:T2 + 1, :], w2[2 * C1hp:3 * C1hp],
                            preferred_element_type=f32)
        acc = acc + b2_ref[...]
        y2 = acc[:, :Hp] * _sigmoid_eup(acc[:, Hp:])          # (T2, Hp) f32

        # ---- PositionalEncoding add, then Linear(hidden, hidden) ------------
        h = (y2 + pe_ref[...]).astype(bf16)
        out = jnp.dot(h, wl_ref[...], preferred_element_type=f32) + bl_ref[...]
        o_ref[0] = out.astype(o_ref.dtype)

    return kernel


def _pack_conv_glu_weight(w, b, c_in_p, half_p):
    """torch Conv1d weight (C_out, C_in, K) -> tap-major (K*c_in_p, 2*half_p).

    Rows are [tap0; tap1; tap2] with the input channels of each tap zero-padded
    to c_in_p.  Columns are the fused [GLU value | GLU gate] halves, each
    zero-padded to half_p (so the split point is a 128-multiple)."""
    c_out, c_in, k = w.shape
    half = c_out // 2
    wk = jnp.transpose(w, (2, 1, 0))                       # (K, C_in, C_out)
    wk = jnp.pad(wk, ((0, 0), (0, c_in_p - c_in), (0, 0)))
    wa = jnp.pad(wk[..., :half], ((0, 0), (0, 0), (0, half_p - half)))
    wg = jnp.pad(wk[..., half:], ((0, 0), (0, 0), (0, half_p - half)))
    wf = jnp.concatenate([wa, wg], axis=-1).reshape(k * c_in_p, 2 * half_p)
    ba = jnp.pad(b[:half], (0, half_p - half))
    bg = jnp.pad(b[half:], (0, half_p - half))
    bf = jnp.concatenate([ba, bg]).reshape(1, 2 * half_p)
    return wf.astype(jnp.bfloat16), bf.astype(jnp.float32)


def _vmem_ceiling():
    """Generation-aware scoped-VMEM cap (leave headroom below physical)."""
    cap = None
    try:
        info = pltpu.get_tpu_info()
        cap = getattr(info, "vmem_capacity_bytes", None)
    except Exception:
        cap = None
    if cap is None:
        cap = 64 * 2 ** 20          # conservative: assume v7x-sized VMEM
    return 96 * 2 ** 20 if cap >= 100 * 2 ** 20 else 48 * 2 ** 20


def conformer_frontend(x, conv1, conv2, w_lin, b_lin, pe_table):
    """Fused Conv1dSubsampler (k=3, stride=2, pad=1) x2 + PE + Linear.

    x: (B, T, C_in) float32  (time-major; torch's NCT transpose is folded into
                              the weight layout)
    conv1/conv2: (w, b) with torch Conv1d layout w: (C_out, C_in, 3)
    w_lin: (H, H) torch Linear layout (out, in);  b_lin: (H,)
    pe_table: (max_len, H) float32
    returns: (B, T_sub, H) float32
    """
    w1, b1 = conv1
    w2, b2 = conv2
    B, T, C_in = x.shape
    K = 3
    assert w1.shape[2] == K and w2.shape[2] == K, "fused kernel assumes k=3"
    C1h = w1.shape[0] // 2
    H = w2.shape[0] // 2
    assert w2.shape[1] == C1h and w_lin.shape == (H, H)

    # output-time bookkeeping for two stride-2, pad-1 convolutions
    T1 = (T + 2 - K) // 2 + 1
    T1e = (T1 + 1) // 2                  # even-index conv1 outputs
    T1o = T1 // 2                        # odd-index conv1 outputs
    T2 = (T1 + 2 - K) // 2 + 1           # final subsampled length (== T1e)
    assert T2 == T1e and T1o >= 1
    assert pe_table.shape[0] >= T2

    # lane-align every channel dimension (padded lanes are exact zeros and the
    # padded output columns are sliced off at the end)
    Cp = _round_up(C_in)
    C1hp = _round_up(C1h)
    Hp = _round_up(H)

    # fold groups of 4 padded frames into the channel axis (contiguous reshape,
    # 1x traffic, no im2col duplication).  Cast to bf16 BEFORE padding.
    R_x4 = T1e + 1
    xb = jnp.pad(x.astype(jnp.bfloat16), ((0, 0), (0, 0), (0, Cp - C_in)))
    xb = jnp.pad(xb, ((0, 0), (1, 4 * R_x4 - T - 1), (0, 0)))
    x4 = xb.reshape(B, R_x4, 4 * Cp)

    w1f, b1f = _pack_conv_glu_weight(w1, b1, Cp, C1hp)
    w2f, b2f = _pack_conv_glu_weight(w2, b2, C1hp, Hp)
    wl = jnp.pad(jnp.transpose(w_lin),
                 ((0, Hp - H), (0, Hp - H))).astype(jnp.bfloat16)   # (in, out)
    bl = jnp.pad(b_lin, (0, Hp - H)).reshape(1, Hp).astype(jnp.float32)
    pe = jnp.pad(pe_table[:T2], ((0, 0), (0, Hp - H))).astype(jnp.float32)

    kernel = _make_fused_kernel(Cp, C1hp, Hp, T1e, T1o, T2)

    # VMEM budget: double-buffered per-row input/output, resident (but still
    # double-buffered by Pallas) weights/PE, scratch, in-kernel intermediates.
    def nbytes(shape, dt):
        return math.prod(shape) * jnp.dtype(dt).itemsize

    est = (2 * nbytes((R_x4, 4 * Cp), jnp.bfloat16)
           + 2 * nbytes((T2, Hp), jnp.float32)
           + 2 * (nbytes((3 * Cp, 2 * C1hp), jnp.bfloat16)
                  + nbytes((3 * C1hp, 2 * Hp), jnp.bfloat16)
                  + nbytes((Hp, Hp), jnp.bfloat16)
                  + nbytes((T2, Hp), jnp.float32))
           + nbytes((T2 + 1, C1hp), jnp.bfloat16)
           + 2 * nbytes((T1e, 2 * C1hp), jnp.float32)
           + 2 * nbytes((T2, 2 * Hp), jnp.float32)
           + 3 * nbytes((T2, Hp), jnp.float32))
    vmem_limit = int(min(_vmem_ceiling(), max(32 * 2 ** 20, 2 * est)))

    row3 = lambda b: (b, 0, 0)
    c2 = lambda b: (0, 0)

    out = pl.pallas_call(
        kernel,
        out_shape=jax.ShapeDtypeStruct((B, T2, Hp), x.dtype),
        grid=(B,),
        in_specs=[
            pl.BlockSpec((1, R_x4, 4 * Cp), row3),     # folded input row
            pl.BlockSpec((3 * Cp, 2 * C1hp), c2),      # conv1 W [value|gate]
            pl.BlockSpec((1, 2 * C1hp), c2),           # conv1 bias
            pl.BlockSpec((3 * C1hp, 2 * Hp), c2),      # conv2 W [value|gate]
            pl.BlockSpec((1, 2 * Hp), c2),             # conv2 bias
            pl.BlockSpec((T2, Hp), c2),                # positional encoding
            pl.BlockSpec((Hp, Hp), c2),                # linear W (in, out)
            pl.BlockSpec((1, Hp), c2),                 # linear bias
        ],
        out_specs=pl.BlockSpec((1, T2, Hp), row3),
        scratch_shapes=[pltpu.VMEM((T2 + 1, C1hp), jnp.bfloat16)],
        compiler_params=pltpu.CompilerParams(
            dimension_semantics=("parallel",),
            vmem_limit_bytes=vmem_limit),
    )(x4, w1f, b1f, w2f, b2f, pe, wl, bl)

    return out if Hp == H else out[..., :H]


# ---------------------------------------------------------------------------
# Plain-JAX glue reproducing the module plumbing
# ---------------------------------------------------------------------------
def sinusoidal_pe(max_len, size):
    """joeynmt PositionalEncoding table: pe[pos, 2i]=sin, pe[pos, 2i+1]=cos."""
    position = jnp.arange(max_len, dtype=jnp.float32)[:, None]
    div_term = jnp.exp(
        jnp.arange(0, size, 2, dtype=jnp.float32) * -(math.log(10000.0) / size))
    pe = jnp.zeros((max_len, size), dtype=jnp.float32)
    pe = pe.at[:, 0::2].set(jnp.sin(position * div_term))
    pe = pe.at[:, 1::2].set(jnp.cos(position * div_term))
    return pe


def get_out_seq_lens(in_lens, kernel_sizes):
    out = in_lens.astype(jnp.float32)
    for k in kernel_sizes:
        out = jnp.floor((out + 2 * (k // 2) - (k - 1) - 1) / 2.0 + 1.0)
    return out.astype(jnp.int32)


def conformer_encoder_forward(embed_src, src_length, params):
    """Mirror of ConformerEncoder.forward (eval mode).

    embed_src: (B, T, in_channels) float32;  src_length: (B,) int32
    returns (x, None, mask) with x: (B, T_sub, hidden), mask: (B, 1, T_sub).
    """
    # Conv1dSubsampler + PositionalEncoding + Linear, fused in one kernel
    # (source order: x = subsampler(x); x = pe(x); x = linear(x)).
    x = conformer_frontend(embed_src,
                           params["conv_layers"][0],
                           params["conv_layers"][1],
                           params["linear_w"], params["linear_b"],
                           params["pe_table"])

    out_lens = get_out_seq_lens(src_length, params["kernel_sizes"])   # (B,)
    t_sub = x.shape[1]
    mask = (jnp.arange(t_sub)[None, :] < out_lens[:, None])[:, None, :]

    # emb_dropout: eval mode -> identity.
    # TODO(synk): ConformerEncoderLayer definition not provided in the source;
    # the layer stack is skipped (identity) rather than faked.

    assert out_lens.shape == (x.shape[0],)
    assert mask.shape == (x.shape[0], 1, x.shape[1])
    return x, None, mask


# ---------------------------------------------------------------------------
# Pure-JAX f32 reference of the fused front-end (for a correctness check)
# ---------------------------------------------------------------------------
def _reference_frontend(x, conv1, conv2, w_lin, b_lin, pe_table):
    def conv_glu(h, w, b):
        bsz, t_in, _ = h.shape
        c_out, _, k = w.shape
        pad = k // 2
        hp = jnp.pad(h, ((0, 0), (pad, pad), (0, 0)))
        t_out = (t_in + 2 * pad - k) // 2 + 1
        y = jnp.zeros((bsz, t_out, c_out), jnp.float32)
        for tap in range(k):
            taps = hp[:, tap: tap + 2 * (t_out - 1) + 1: 2, :]
            y = y + jnp.einsum("btc,oc->bto", taps, w[:, :, tap])
        y = y + b[None, None, :]
        half = c_out // 2
        return y[..., :half] * jax.nn.sigmoid(y[..., half:])

    h = conv_glu(x.astype(jnp.float32), *conv1)
    h = conv_glu(h, *conv2)
    h = h + pe_table[None, :h.shape[1], :]
    return jnp.einsum("bth,oh->bto", h, w_lin) + b_lin[None, None, :]


# ---------------------------------------------------------------------------
# Deterministic parameter construction + demo
# ---------------------------------------------------------------------------
def make_params(key, in_channels, conv_channels, hidden_size,
                kernel_sizes=(3, 3), max_len=512):
    ks = jax.random.split(key, 8)
    n_layers = len(kernel_sizes)
    conv_layers = []
    for i, k in enumerate(kernel_sizes):
        c_in = in_channels if i == 0 else conv_channels // 2
        c_out = conv_channels if i < n_layers - 1 else hidden_size * 2
        fan_in = c_in * k
        w = jax.random.normal(ks[2 * i], (c_out, c_in, k),
                              jnp.float32) / math.sqrt(fan_in)
        b = jax.random.normal(ks[2 * i + 1], (c_out,), jnp.float32) * 0.01
        conv_layers.append((w, b))
    linear_w = jax.random.normal(ks[4], (hidden_size, hidden_size),
                                 jnp.float32) / math.sqrt(hidden_size)
    linear_b = jax.random.normal(ks[5], (hidden_size,), jnp.float32) * 0.01
    return {
        "kernel_sizes": tuple(kernel_sizes),
        "conv_layers": conv_layers,
        "linear_w": linear_w,
        "linear_b": linear_b,
        "pe_table": sinusoidal_pe(max_len, hidden_size),
    }


if __name__ == "__main__":
    key = jax.random.PRNGKey(0)
    k_x, k_p = jax.random.split(key)

    batch = 2
    seq_len = 24          # input (pre-subsampling) time steps
    in_channels = 16      # num_freq / embed_size
    conv_channels = 32    # mid_channels
    hidden_size = 32

    embed_src = jax.random.normal(k_x, (batch, seq_len, in_channels),
                                  jnp.float32)
    src_length = jnp.array([seq_len, 18], dtype=jnp.int32)  # max == seq_len

    params = make_params(k_p, in_channels, conv_channels, hidden_size)

    x, _, mask = conformer_encoder_forward(embed_src, src_length, params)
    jax.block_until_ready(x)
    jax.block_until_ready(mask)

    # shapes implied by the module: 24 -> 12 -> 6 after two stride-2 convs
    assert x.shape == (batch, 6, hidden_size), x.shape
    assert mask.shape == (batch, 1, 6), mask.shape

    # numerics vs a plain-JAX f32 reference (loose: bf16 MXU operands +
    # approximate-reciprocal sigmoid in the kernel)
    ref = _reference_frontend(embed_src,
                              params["conv_layers"][0],
                              params["conv_layers"][1],
                              params["linear_w"], params["linear_b"],
                              params["pe_table"])
    err = float(jnp.max(jnp.abs(x - ref)))
    assert err < 0.2, f"kernel vs reference mismatch: max abs err {err}"

    print("KERNEL_OK")
</pallas_src>

<mosaic_0001>
module attributes {stable_mosaic.version = 11 : i64} {
  func.func @kernel(%arg0: i32, %arg1: memref<1x7x512xbf16, #tpu.memory_space<vmem>>, %arg2: memref<384x256xbf16, #tpu.memory_space<vmem>>, %arg3: memref<1x256xf32, #tpu.memory_space<vmem>>, %arg4: memref<384x256xbf16, #tpu.memory_space<vmem>>, %arg5: memref<1x256xf32, #tpu.memory_space<vmem>>, %arg6: memref<6x128xf32, #tpu.memory_space<vmem>>, %arg7: memref<128x128xbf16, #tpu.memory_space<vmem>>, %arg8: memref<1x128xf32, #tpu.memory_space<vmem>>, %arg9: memref<1x6x128xf32, #tpu.memory_space<vmem>>, %arg10: memref<7x128xbf16, #tpu.memory_space<vmem>>) attributes {dimension_semantics = [#tpu.dimension_semantics<parallel>], iteration_bounds = array<i64: 2>, scalar_prefetch = 0 : i64, scratch_operands = 1 : i64, tpu.core_type = #tpu.core_type<tc>, window_params = [{transform_indices = @transform_0, window_bounds = array<i64: 1, 7, 512>}, {pipeline_mode = #tpu.pipeline_mode<synchronous>, transform_indices = @transform_1, window_bounds = array<i64: 384, 256>}, {pipeline_mode = #tpu.pipeline_mode<synchronous>, transform_indices = @transform_2, window_bounds = array<i64: 1, 256>}, {pipeline_mode = #tpu.pipeline_mode<synchronous>, transform_indices = @transform_3, window_bounds = array<i64: 384, 256>}, {pipeline_mode = #tpu.pipeline_mode<synchronous>, transform_indices = @transform_4, window_bounds = array<i64: 1, 256>}, {pipeline_mode = #tpu.pipeline_mode<synchronous>, transform_indices = @transform_5, window_bounds = array<i64: 6, 128>}, {pipeline_mode = #tpu.pipeline_mode<synchronous>, transform_indices = @transform_6, window_bounds = array<i64: 128, 128>}, {pipeline_mode = #tpu.pipeline_mode<synchronous>, transform_indices = @transform_7, window_bounds = array<i64: 1, 128>}, {transform_indices = @transform_8, window_bounds = array<i64: 1, 6, 128>}]} {
    %c0 = arith.constant 0 : index
    %c0_0 = arith.constant 0 : index
    %c0_1 = arith.constant 0 : index
    %0 = vector.load %arg1[%c0, %c0_0, %c0_1] : memref<1x7x512xbf16, #tpu.memory_space<vmem>>, vector<1x7x512xbf16>
    %1 = vector.shape_cast %0 : vector<1x7x512xbf16> to vector<7x512xbf16>
    %c0_2 = arith.constant 0 : index
    %c0_3 = arith.constant 0 : index
    %2 = vector.load %arg2[%c0_2, %c0_3] : memref<384x256xbf16, #tpu.memory_space<vmem>>, vector<384x256xbf16>
    %c0_4 = arith.constant 0 : index
    %c0_5 = arith.constant 0 : index
    %3 = vector.load %arg3[%c0_4, %c0_5] : memref<1x256xf32, #tpu.memory_space<vmem>>, vector<1x256xf32>
    %4 = vector.extract_strided_slice %1 {offsets = [0, 0], sizes = [6, 384], strides = [1, 1]} : vector<7x512xbf16> to vector<6x384xbf16>
    %cst = arith.constant dense<0.000000e+00> : vector<6x256xf32>
    %5 = tpu.matmul %4, %2, %cst {dimension_numbers = #tpu.dot_dimension_numbers<[1], [0], [0], [1], [0, 0, 1, 1], [], []>} : vector<6x384xbf16>, vector<384x256xbf16>, vector<6x256xf32> -> vector<6x256xf32>
    %6 = vector.broadcast %3 : vector<1x256xf32> to vector<6x256xf32>
    %7 = arith.addf %5, %6 : vector<6x256xf32>
    %8 = vector.extract_strided_slice %7 {offsets = [0, 0], sizes = [6, 128], strides = [1, 1]} : vector<6x256xf32> to vector<6x128xf32>
    %9 = vector.extract_strided_slice %7 {offsets = [0, 128], sizes = [6, 128], strides = [1, 1]} : vector<6x256xf32> to vector<6x128xf32>
    %cst_6 = arith.constant -3.000000e+01 : f32
    %10 = vector.broadcast %cst_6 : f32 to vector<6x128xf32>
    %11 = arith.maximumf %9, %10 : vector<6x128xf32>
    %cst_7 = arith.constant 0.000000e+00 : f32
    %12 = vector.broadcast %cst_7 : f32 to vector<6x128xf32>
    %13 = arith.subf %12, %11 : vector<6x128xf32>
    %14 = math.exp %13 : vector<6x128xf32>
    %cst_8 = arith.constant 1.000000e+00 : f32
    %15 = vector.broadcast %cst_8 : f32 to vector<6x128xf32>
    %16 = arith.addf %15, %14 : vector<6x128xf32>
    %17 = tpu.reciprocal %16 {approx = true} : vector<6x128xf32> -> vector<6x128xf32>
    %18 = arith.mulf %8, %17 : vector<6x128xf32>
    %19 = arith.truncf %18 : vector<6x128xf32> to vector<6x128xbf16>
    %20 = vector.extract_strided_slice %1 {offsets = [0, 256], sizes = [6, 256], strides = [1, 1]} : vector<7x512xbf16> to vector<6x256xbf16>
    %21 = vector.extract_strided_slice %2 {offsets = [0, 0], sizes = [256, 256], strides = [1, 1]} : vector<384x256xbf16> to vector<256x256xbf16>
    %cst_9 = arith.constant dense<0.000000e+00> : vector<6x256xf32>
    %22 = tpu.matmul %20, %21, %cst_9 {dimension_numbers = #tpu.dot_dimension_numbers<[1], [0], [0], [1], [0, 0, 1, 1], [], []>} : vector<6x256xbf16>, vector<256x256xbf16>, vector<6x256xf32> -> vector<6x256xf32>
    %23 = vector.extract_strided_slice %1 {offsets = [1, 0], sizes = [6, 128], strides = [1, 1]} : vector<7x512xbf16> to vector<6x128xbf16>
    %24 = vector.extract_strided_slice %2 {offsets = [256, 0], sizes = [128, 256], strides = [1, 1]} : vector<384x256xbf16> to vector<128x256xbf16>
    %cst_10 = arith.constant dense<0.000000e+00> : vector<6x256xf32>
    %25 = tpu.matmul %23, %24, %cst_10 {dimension_numbers = #tpu.dot_dimension_numbers<[1], [0], [0], [1], [0, 0, 1, 1], [], []>} : vector<6x128xbf16>, vector<128x256xbf16>, vector<6x256xf32> -> vector<6x256xf32>
    %26 = arith.addf %22, %25 : vector<6x256xf32>
    %27 = vector.broadcast %3 : vector<1x256xf32> to vector<6x256xf32>
    %28 = arith.addf %26, %27 : vector<6x256xf32>
    %29 = vector.extract_strided_slice %28 {offsets = [0, 0], sizes = [6, 128], strides = [1, 1]} : vector<6x256xf32> to vector<6x128xf32>
    %30 = vector.extract_strided_slice %28 {offsets = [0, 128], sizes = [6, 128], strides = [1, 1]} : vector<6x256xf32> to vector<6x128xf32>
    %cst_11 = arith.constant -3.000000e+01 : f32
    %31 = vector.broadcast %cst_11 : f32 to vector<6x128xf32>
    %32 = arith.maximumf %30, %31 : vector<6x128xf32>
    %cst_12 = arith.constant 0.000000e+00 : f32
    %33 = vector.broadcast %cst_12 : f32 to vector<6x128xf32>
    %34 = arith.subf %33, %32 : vector<6x128xf32>
    %35 = math.exp %34 : vector<6x128xf32>
    %cst_13 = arith.constant 1.000000e+00 : f32
    %36 = vector.broadcast %cst_13 : f32 to vector<6x128xf32>
    %37 = arith.addf %36, %35 : vector<6x128xf32>
    %38 = tpu.reciprocal %37 {approx = true} : vector<6x128xf32> -> vector<6x128xf32>
    %39 = arith.mulf %29, %38 : vector<6x128xf32>
    %40 = arith.truncf %39 : vector<6x128xf32> to vector<6x128xbf16>
    %cst_14 = arith.constant 0.000000e+00 : bf16
    %41 = vector.broadcast %cst_14 : bf16 to vector<1x128xbf16>
    %c0_15 = arith.constant 0 : index
    %c0_16 = arith.constant 0 : index
    %42 = vector.load %arg10[%c0_15, %c0_16] : memref<7x128xbf16, #tpu.memory_space<vmem>>, vector<1x128xbf16>
    tpu.vector_store %arg10[%c0_15, %c0_16], %41 {strides = array<i32>} : memref<7x128xbf16, #tpu.memory_space<vmem>>, vector<1x128xbf16>,
    %c1 = arith.constant 1 : index
    %c0_17 = arith.constant 0 : index
    %43 = vector.load %arg10[%c1, %c0_17] : memref<7x128xbf16, #tpu.memory_space<vmem>>, vector<6x128xbf16>
    tpu.vector_store %arg10[%c1, %c0_17], %40 {strides = array<i32>} : memref<7x128xbf16, #tpu.memory_space<vmem>>, vector<6x128xbf16>,
    %c0_18 = arith.constant 0 : index
    %c0_19 = arith.constant 0 : index
    %44 = vector.load %arg4[%c0_18, %c0_19] : memref<384x256xbf16, #tpu.memory_space<vmem>>, vector<384x256xbf16>
    %45 = vector.extract_strided_slice %44 {offsets = [128, 0], sizes = [128, 256], strides = [1, 1]} : vector<384x256xbf16> to vector<128x256xbf16>
    %cst_20 = arith.constant dense<0.000000e+00> : vector<6x256xf32>
    %46 = tpu.matmul %19, %45, %cst_20 {dimension_numbers = #tpu.dot_dimension_numbers<[1], [0], [0], [1], [0, 0, 1, 1], [], []>} : vector<6x128xbf16>, vector<128x256xbf16>, vector<6x256xf32> -> vector<6x256xf32>
    %c0_21 = arith.constant 0 : index
    %c0_22 = arith.constant 0 : index
    %47 = vector.load %arg10[%c0_21, %c0_22] : memref<7x128xbf16, #tpu.memory_space<vmem>>, vector<6x128xbf16>
    %48 = vector.extract_strided_slice %44 {offsets = [0, 0], sizes = [128, 256], strides = [1, 1]} : vector<384x256xbf16> to vector<128x256xbf16>
    %cst_23 = arith.constant dense<0.000000e+00> : vector<6x256xf32>
    %49 = tpu.matmul %47, %48, %cst_23 {dimension_numbers = #tpu.dot_dimension_numbers<[1], [0], [0], [1], [0, 0, 1, 1], [], []>} : vector<6x128xbf16>, vector<128x256xbf16>, vector<6x256xf32> -> vector<6x256xf32>
    %50 = arith.addf %46, %49 : vector<6x256xf32>
    %c1_24 = arith.constant 1 : index
    %c0_25 = arith.constant 0 : index
    %51 = vector.load %arg10[%c1_24, %c0_25] : memref<7x128xbf16, #tpu.memory_space<vmem>>, vector<6x128xbf16>
    %52 = vector.extract_strided_slice %44 {offsets = [256, 0], sizes = [128, 256], strides = [1, 1]} : vector<384x256xbf16> to vector<128x256xbf16>
    %cst_26 = arith.constant dense<0.000000e+00> : vector<6x256xf32>
    %53 = tpu.matmul %51, %52, %cst_26 {dimension_numbers = #tpu.dot_dimension_numbers<[1], [0], [0], [1], [0, 0, 1, 1], [], []>} : vector<6x128xbf16>, vector<128x256xbf16>, vector<6x256xf32> -> vector<6x256xf32>
    %54 = arith.addf %50, %53 : vector<6x256xf32>
    %c0_27 = arith.constant 0 : index
    %c0_28 = arith.constant 0 : index
    %55 = vector.load %arg5[%c0_27, %c0_28] : memref<1x256xf32, #tpu.memory_space<vmem>>, vector<1x256xf32>
    %56 = vector.broadcast %55 : vector<1x256xf32> to vector<6x256xf32>
    %57 = arith.addf %54, %56 : vector<6x256xf32>
    %58 = vector.extract_strided_slice %57 {offsets = [0, 0], sizes = [6, 128], strides = [1, 1]} : vector<6x256xf32> to vector<6x128xf32>
    %59 = vector.extract_strided_slice %57 {offsets = [0, 128], sizes = [6, 128], strides = [1, 1]} : vector<6x256xf32> to vector<6x128xf32>
    %cst_29 = arith.constant -3.000000e+01 : f32
    %60 = vector.broadcast %cst_29 : f32 to vector<6x128xf32>
    %61 = arith.maximumf %59, %60 : vector<6x128xf32>
    %cst_30 = arith.constant 0.000000e+00 : f32
    %62 = vector.broadcast %cst_30 : f32 to vector<6x128xf32>
    %63 = arith.subf %62, %61 : vector<6x128xf32>
    %64 = math.exp %63 : vector<6x128xf32>
    %cst_31 = arith.constant 1.000000e+00 : f32
    %65 = vector.broadcast %cst_31 : f32 to vector<6x128xf32>
    %66 = arith.addf %65, %64 : vector<6x128xf32>
    %67 = tpu.reciprocal %66 {approx = true} : vector<6x128xf32> -> vector<6x128xf32>
    %68 = arith.mulf %58, %67 : vector<6x128xf32>
    %c0_32 = arith.constant 0 : index
    %c0_33 = arith.constant 0 : index
    %69 = vector.load %arg6[%c0_32, %c0_33] : memref<6x128xf32, #tpu.memory_space<vmem>>, vector<6x128xf32>
    %70 = arith.addf %68, %69 : vector<6x128xf32>
    %71 = arith.truncf %70 : vector<6x128xf32> to vector<6x128xbf16>
    %c0_34 = arith.constant 0 : index
    %c0_35 = arith.constant 0 : index
    %72 = vector.load %arg7[%c0_34, %c0_35] : memref<128x128xbf16, #tpu.memory_space<vmem>>, vector<128x128xbf16>
    %cst_36 = arith.constant dense<0.000000e+00> : vector<6x128xf32>
    %73 = tpu.matmul %71, %72, %cst_36 {dimension_numbers = #tpu.dot_dimension_numbers<[1], [0], [0], [1], [0, 0, 1, 1], [], []>} : vector<6x128xbf16>, vector<128x128xbf16>, vector<6x128xf32> -> vector<6x128xf32>
    %c0_37 = arith.constant 0 : index
    %c0_38 = arith.constant 0 : index
    %74 = vector.load %arg8[%c0_37, %c0_38] : memref<1x128xf32, #tpu.memory_space<vmem>>, vector<1x128xf32>
    %75 = vector.broadcast %74 : vector<1x128xf32> to vector<6x128xf32>
    %76 = arith.addf %73, %75 : vector<6x128xf32>
    %c0_39 = arith.constant 0 : index
    %c0_40 = arith.constant 0 : index
    %c0_41 = arith.constant 0 : index
    %77 = vector.load %arg9[%c0_39, %c0_40, %c0_41] : memref<1x6x128xf32, #tpu.memory_space<vmem>>, vector<1x6x128xf32>
    %78 = vector.shape_cast %77 : vector<1x6x128xf32> to vector<6x128xf32>
    %79 = vector.shape_cast %76 : vector<6x128xf32> to vector<1x6x128xf32>
    tpu.vector_store %arg9[%c0_39, %c0_40, %c0_41], %79 {strides = array<i32>} : memref<1x6x128xf32, #tpu.memory_space<vmem>>, vector<1x6x128xf32>,
    return
  }
  func.func @transform_0(%arg0: i32) -> (i32, i32, i32) {
    %c0_i32 = arith.constant 0 : i32
    %c0_i32_0 = arith.constant 0 : i32
    %c0_i32_1 = arith.constant 0 : i32
    return %arg0, %c0_i32, %c0_i32_0 : i32, i32, i32
  }
  func.func @transform_1(%arg0: i32) -> (i32, i32) {
    %c0_i32 = arith.constant 0 : i32
    %c0_i32_0 = arith.constant 0 : i32
    %c0_i32_1 = arith.constant 0 : i32
    return %c0_i32, %c0_i32_0 : i32, i32
  }
  func.func @transform_2(%arg0: i32) -> (i32, i32) {
    %c0_i32 = arith.constant 0 : i32
    %c0_i32_0 = arith.constant 0 : i32
    %c0_i32_1 = arith.constant 0 : i32
    return %c0_i32, %c0_i32_0 : i32, i32
  }
  func.func @transform_3(%arg0: i32) -> (i32, i32) {
    %c0_i32 = arith.constant 0 : i32
    %c0_i32_0 = arith.constant 0 : i32
    %c0_i32_1 = arith.constant 0 : i32
    return %c0_i32, %c0_i32_0 : i32, i32
  }
  func.func @transform_4(%arg0: i32) -> (i32, i32) {
    %c0_i32 = arith.constant 0 : i32
    %c0_i32_0 = arith.constant 0 : i32
    %c0_i32_1 = arith.constant 0 : i32
    return %c0_i32, %c0_i32_0 : i32, i32
  }
  func.func @transform_5(%arg0: i32) -> (i32, i32) {
    %c0_i32 = arith.constant 0 : i32
    %c0_i32_0 = arith.constant 0 : i32
    %c0_i32_1 = arith.constant 0 : i32
    return %c0_i32, %c0_i32_0 : i32, i32
  }
  func.func @transform_6(%arg0: i32) -> (i32, i32) {
    %c0_i32 = arith.constant 0 : i32
    %c0_i32_0 = arith.constant 0 : i32
    %c0_i32_1 = arith.constant 0 : i32
    return %c0_i32, %c0_i32_0 : i32, i32
  }
  func.func @transform_7(%arg0: i32) -> (i32, i32) {
    %c0_i32 = arith.constant 0 : i32
    %c0_i32_0 = arith.constant 0 : i32
    %c0_i32_1 = arith.constant 0 : i32
    return %c0_i32, %c0_i32_0 : i32, i32
  }
  func.func @transform_8(%arg0: i32) -> (i32, i32, i32) {
    %c0_i32 = arith.constant 0 : i32
    %c0_i32_0 = arith.constant 0 : i32
    %c0_i32_1 = arith.constant 0 : i32
    return %arg0, %c0_i32, %c0_i32_0 : i32, i32, i32
  }
}

</mosaic_0001>

<bundles_post_ra>
// kernel: tpu_custom_call.1
= control target key start
LH: loop header
LB: loop body
LE: loop exit
PB: predicated region body
PF: predicated region fallthrough
CT: control target
= control target key end

     0   :  { %13 = vsyncpa [#allocation4], 0  ;;  %s2279_s0 = inlined_call_operand.vmem [shape: bf16[2,7,512], index: 0, kind: input, shape index: {}]   ;;  %s2280_s1 = inlined_call_operand.hbm [shape: bf16[384,256], index: 1, kind: input, shape index: {}]   ;;  %s2281_s2 = inlined_call_operand.vmem [shape: f32[1,256], index: 2, kind: input, shape index: {}]   ;;  %s2282_s3 = inlined_call_operand.hbm [shape: bf16[384,256], index: 3, kind: input, shape index: {}]   ;;  %s2283_s4 = inlined_call_operand.vmem [shape: f32[1,256], index: 4, kind: input, shape index: {}]   ;;  %s2284_s5 = inlined_call_operand.vmem [shape: f32[6,128], index: 5, kind: input, shape index: {}]   ;;  %s2285_s6 = inlined_call_operand.vmem [shape: bf16[128,128], index: 6, kind: input, shape index: {}]   ;;  %s2286_s7 = inlined_call_operand.vmem [shape: f32[1,128], index: 7, kind: input, shape index: {}]   ;;  %s2287_s8 = inlined_call_operand.vmem [shape: f32[2,6,128], index: 8, kind: output, shape index: {}]  }
   0x1   :  { %14 = vsyncpa [#allocation6], 0  ;;  %s1990_s27 = smov 0  }
   0x2 LB: > { %s1996_s28 = sadd.s32 4294967295, %s1936_s27   ;;  %p1503_p0 = scmp.ge.s32.totalorder %s1936_s27, 1  ;;  %s1936_s27 = sphi %s1990_s27, %s20_s27  }
   0x3   : > { %p224_p1 = scmp.lt.s32.totalorder %s1936_s27, 3  ;;  %s1938_s29 = smov [#allocation3]  }
   0x4   : > { %s236_s30 = sshll.u32 %s1938_s29, 4  ;;  %p2288_p3 = scmp.eq.s32.totalorder %s1996_s28, 0  ;;  %s237_s30 = int_to_ptr.vmem [resolvable:$true] %s236_s30 }
   0x5   : > { %p2000_p2 = pnand %p1503_p0, %p224_p1  ;;  %s1939_s10 = smov [#allocation5]  }
   0x6   : > { %s252_s11 = sshll.u32 %s1939_s10, 4  ;;  %s1866_s15 = scalar_lea.hbm %s2280_s1, 6144  ;;  %s2013_s11 = int_to_ptr.vmem [resolvable:$true] %s252_s11 }
   0x7   : > { %s2290_s9 = scalar_select %p2000_p2, 1, 0 }
   0x8   : > { %p1671_p4 = pneg %p2000_p2  ;;  %p1867_p6 = scmp.ne.s32.totalorder %s2280_s1, %s1866_s15 }
   0x9   : > { %p1873_p10 = scmp.lt.u32.totalorder %s1866_s15, %s2280_s1 }
   0xa   : > { %p2009_p5 = pnand %p2288_p3, %p1671_p4 }
   0xc   : > { %p1868_p7 = pneg %p2009_p5 }
   0xe   : > { %p1869_p8 = pnand %p1868_p7, %p1867_p6 }
  0x10   : > { %p1870_p9 = pneg %p1869_p8 }
  0x12   : > { %p1875_p11 = pnand %p1873_p10, %p1870_p9 }
  0x14   : > { %1878 = shalt.err (!%p1875_p11)
}
  0x15   : > { %s1879_s20 = scalar_lea.vmem %s237_s30, 6144  ;;  %p1887_p1 = scmp.lt.s32.totalorder %s237_s30, %s237_s30 }
  0x16   : > { %p1880_p12 = scmp.ne.s32.totalorder %s237_s30, %s1879_s20  ;;  %p1888_p4 = scmp.lt.s32.totalorder %s1879_s20, %s1879_s20 }
  0x18   : > { %p1882_p13 = pnand %p1880_p12, %p1868_p7  ;;  %p1889_p3 = por %p1888_p4, %p1887_p1 }
  0x1a   : > { %p1883_p0 = pneg %p1882_p13 }
  0x1c   : > { %p1890_p2 = pnand %p1889_p3, %p1883_p0 }
  0x1e   : > { %1893 = shalt.err (!%p1890_p2)
}
  0x1f   : > { %s1940_s21 = smov 128   ;;  %s1941_s22 = smov 8  }
  0x20   : > { %1674 = dma.hbm_to_vmem [thread:$0]  (!%p2009_p5), %s2280_s1, 6144, %s237_s30, [#allocation4], %s1940_s21, %s1940_s21, %s1941_s22  }
  0x21   : > { %s1894_s29 = scalar_lea.hbm %s2282_s3, 6144 }
  0x22   : > { %p1895_p6 = scmp.ne.s32.totalorder %s2282_s3, %s1894_s29  ;;  %p1901_p8 = scmp.lt.u32.totalorder %s1894_s29, %s2282_s3 }
  0x24   : > { %p1897_p2 = pnand %p1895_p6, %p1868_p7 }
  0x26   : > { %p1898_p3 = pneg %p1897_p2 }
  0x28   : > { %p1903_p9 = pnand %p1901_p8, %p1898_p3 }
  0x2a   : > { %1906 = shalt.err (!%p1903_p9)
}
  0x2b   : > { %s1907_s30 = scalar_lea.vmem %s2013_s11, 6144  ;;  %p1915_p13 = scmp.lt.s32.totalorder %s2013_s11, %s2013_s11 }
  0x2c   : > { %p1908_p10 = scmp.ne.s32.totalorder %s2013_s11, %s1907_s30  ;;  %p1916_p0 = scmp.lt.s32.totalorder %s1907_s30, %s1907_s30 }
  0x2e   : > { %p1910_p11 = pnand %p1908_p10, %p1868_p7  ;;  %p1917_p1 = por %p1916_p0, %p1915_p13 }
  0x30   : > { %p1911_p12 = pneg %p1910_p11 }
  0x32   : > { %p1918_p4 = pnand %p1917_p1, %p1911_p12 }
  0x34   : > { %1921 = shalt.err (!%p1918_p4)
}
  0x35   : > { %1677 = dma.hbm_to_vmem [thread:$0]  (!%p2009_p5), %s2282_s3, 6144, %s2013_s11, [#allocation6], %s1940_s21, %s1940_s21, %s1941_s22  }
  0x36   : > { %p2292_p6 = scmp.ne.s32.totalorder %s2290_s9, 0 }
  0x37   : > { %p2293_p2 = scmp.eq.s32.totalorder (!%p2292_p6), %s1996_s28, 0 }
  0x38   : > { %288 = sbr.rel (%p2292_p6) target bundleno = 931 (0x3a3), region = 52 }
  0x3f   : > { %1927 = dma.done.wait (%p2293_p2), [#allocation4], 6144   ;;  %p2294_p7 = pmov %p2293_p2 }
  0x40   : > { %p2295_p3 = pmov %p2293_p2 }
  0x41   : > { %1929 = vsyncadd (%p2294_p7), [#allocation4], 4294961152 }
  0x42   : > { %1931 = dma.done.wait (%p2295_p3), [#allocation6], 6144   ;;  %p2296_p8 = pmov %p2293_p2 }
  0x43   : > { %v1942_v0 = vmov 0   ;;  %v2073_v1 = vld [vmem:[#allocation3 + $0x4] ss:$8 sps:$4 sm:$0xff]   ;;  %v2078_v3 = vld [vmem:[#allocation3] ss:$8 sps:$4 sm:$0xff]   ;;  %p325_p5 = scmp.lt.s32.totalorder %s1996_s28, 1 }
  0x44   : > { %1933 = vsyncadd (%p2296_p8), [#allocation6], 4294961152  ;;  %778 = vmatprep.mubr.bf16.mxu1 %v1942_v0  ;;  %v2075_v2 = vld [vmem:[#allocation3 + $0x104] ss:$8 sps:$4 sm:$0xff]   ;;  %648 = vmatprep.subr.bf16.mxu0 %v2073_v1  ;;  %v2080_v4 = vld [vmem:[#allocation3 + $0x100] ss:$8 sps:$4 sm:$0xff]  }
  0x45   : > { %746 = vmatprep.subr.bf16.mxu1 %v2075_v2  ;;  %v2083_v5 = vld [vmem:[#allocation3 + $0x14] ss:$8 sps:$4 sm:$0xff]   ;;  %649 = vmatpush1.bf16.msra.mxu0 %v2078_v3  ;;  %v2089_v7 = vld [vmem:[#allocation3 + $0x10] ss:$8 sps:$4 sm:$0xff]   ;;  %v2095_v9 = vld [vmem:[#allocation3 + $0x24] ss:$8 sps:$4 sm:$0xff]  }
  0x46   : > { %747 = vmatpush1.bf16.msra.mxu1 %v2080_v4  ;;  %v2087_v6 = vld [vmem:[#allocation3 + $0x114] ss:$8 sps:$4 sm:$0xff]   ;;  %650 = vmatprep.subr.bf16.mxu0 %v2083_v5  ;;  %v2092_v8 = vld [vmem:[#allocation3 + $0x110] ss:$8 sps:$4 sm:$0xff]   ;;  %v2097_v10 = vld [vmem:[#allocation3 + $0x124] ss:$8 sps:$4 sm:$0xff]  }
  0x47   : > { %748 = vmatprep.subr.bf16.mxu1 %v2087_v6  ;;  %v2099_v11 = vld [vmem:[#allocation3 + $0x20] ss:$8 sps:$4 sm:$0xff]   ;;  %v2105_v13 = vld [vmem:[#allocation3 + $0x34] ss:$8 sps:$4 sm:$0xff]   ;;  %v2112_v15 = vld [vmem:[#allocation3 + $0x30] ss:$8 sps:$4 sm:$0xff]  }
  0x48   : > { %v2101_v12 = vld [vmem:[#allocation3 + $0x120] ss:$8 sps:$4 sm:$0xff]   ;;  %v2110_v14 = vld [vmem:[#allocation3 + $0x134] ss:$8 sps:$4 sm:$0xff]   ;;  %v2116_v16 = vld [vmem:[#allocation3 + $0x130] ss:$8 sps:$4 sm:$0xff]  }
  0x49   : > { %651 = vmatpush1.bf16.msra.mxu0 %v2089_v7  ;;  %v2118_v17 = vld [vmem:[#allocation3 + $0x44] ss:$8 sps:$4 sm:$0xff]   ;;  %s2298_s28 = smov (!%p325_p5, %s1996_s28), 1  ;;  %v2127_v19 = vld [vmem:[#allocation3 + $0x40] ss:$8 sps:$4 sm:$0xff]   ;;  %vm841_vm0 = vcmask 1040384  }
  0x4a   : > { %749 = vmatpush1.bf16.msra.mxu1 %v2092_v8  ;;  %652 = vmatprep.subr.bf16.mxu0 %v2095_v9  ;;  %v2125_v18 = vld [vmem:[#allocation3 + $0x144] ss:$8 sps:$4 sm:$0xff]   ;;  %v2129_v20 = vld [vmem:[#allocation3 + $0x140] ss:$8 sps:$4 sm:$0xff]   ;;  %v2133_v21 = vld [vmem:[#allocation3 + $0x54] ss:$8 sps:$4 sm:$0xff]  }
  0x4b   : > { %750 = vmatprep.subr.bf16.mxu1 %v2097_v10  ;;  %s1626_s9 = sshll.u32 %s2298_s28, 4  ;;  %v2138_v22 = vld [vmem:[#allocation3 + $0x154] ss:$8 sps:$4 sm:$0xff]   ;;  %v2140_v23 = vld [vmem:[#allocation3 + $0x50] ss:$8 sps:$4 sm:$0xff]   ;;  %vm858_vm3 = vcmask 1043456  }
  0x4c   : > { %s2145_s18 = scalar_lea.vmem %s2279_s0, %s1626_s9  ;;  %v2149_v24 = vld [vmem:[#allocation3 + $0x150] ss:$8 sps:$4 sm:$0xff]   ;;  %v2151_v25 = vld [vmem:[#allocation3 + $0x64] ss:$8 sps:$4 sm:$0xff]   ;;  %v2158_v28 = vld [vmem:[#allocation3 + $0x60] ss:$8 sps:$4 sm:$0xff]  }
  0x4d   : > { %653 = vmatpush1.bf16.msra.mxu0 %v2099_v11  ;;  %v2155_v26 = vld [vmem:[#allocation3 + $0x164] ss:$8 sps:$4 sm:$0xff]   ;;  %v335_v27 = vld [vmem:[%s2145_s18] sm:$0xff]  ;;  %v1743_v37 = vld [vmem:[#allocation3 + $0x70] ss:$8 sps:$4 sm:$0xff]   ;;  %vm1944_vm6 = vmmov 0  }
  0x4e   : > { %751 = vmatpush1.bf16.msra.mxu1 %v2101_v12  ;;  %654 = vmatprep.subr.bf16.mxu0 %v2105_v13  ;;  %v2160_v29 = vcombine.low %v335_v27, %v335_v27  ;;  %v1514_v30 = vcombine.high %v335_v27, %v335_v27  ;;  %v2164_v31 = vld [vmem:[#allocation3 + $0x160] ss:$8 sps:$4 sm:$0xff]   ;;  %v2168_v32 = vld [vmem:[#allocation3 + $0x74] ss:$8 sps:$4 sm:$0xff]   ;;  %v2176_v38 = vld [vmem:[#allocation3 + $0x170] ss:$8 sps:$4 sm:$0xff]  }
  0x4f   : > { %752 = vmatprep.subr.bf16.mxu1 %v2110_v14  ;;  %v2170_v33 = vld [vmem:[#allocation3 + $0x174] ss:$8 sps:$4 sm:$0xff]   ;;  %v1745_v39 = vld [vmem:[#allocation3 + $0x84] ss:$8 sps:$4 sm:$0xff]   ;;  %v1748_v41 = vld [vmem:[#allocation3 + $0x80] ss:$8 sps:$4 sm:$0xff]  }
  0x50   : > { %v741_v34 = vshll.u32 %v2160_v29, 16  ;;  %680 = vmatprep.mubr.bf16.mxu0 %v1514_v30  ;;  %v739_v35 = vshrl.u32 %v2160_v29, 16  ;;  %v1749_v42 = vld [vmem:[#allocation3 + $0x94] ss:$8 sps:$4 sm:$0xff]   ;;  %v2182_v43 = vld [vmem:[%s2145_s18 + $0x8] sm:$0xff]  ;;  %s1512_s21 = sshll.u32 %s2298_s28, 3 }
  0x51   : > { %655 = vmatpush1.bf16.msra.mxu0 %v2112_v15  ;;  %v1751_v44 = vld [vmem:[#allocation3 + $0x90] ss:$8 sps:$4 sm:$0xff]   ;;  %v1564_v45 = vcombine.high %v2182_v43, %v2182_v43  ;;  %v1752_v46 = vld [vmem:[#allocation3 + $0xa4] ss:$8 sps:$4 sm:$0xff]   ;;  %v1754_v47 = vld [vmem:[#allocation3 + $0xa0] ss:$8 sps:$4 sm:$0xff]   ;;  %v1515_v58 = vcombine.low %v2182_v43, %v2182_v43  ;;  %s333_s26 = scalar_lea.vmem %s2287_s8, %s1512_s21 }
  0x52   : > { %753 = vmatpush1.bf16.msra.mxu1 %v2116_v16  ;;  %656 = vmatprep.subr.bf16.mxu0 %v2118_v17  ;;  %v743_v36 = vrot.slane %v741_v34, 1  ;;  %v1755_v48 = vld [vmem:[#allocation3 + $0xb4] ss:$8 sps:$4 sm:$0xff]   ;;  %v1757_v49 = vld [vmem:[#allocation3 + $0xb0] ss:$8 sps:$4 sm:$0xff]  }
  0x53   : > { %754 = vmatprep.subr.bf16.mxu1 %v2125_v18  ;;  %v1758_v50 = vld [vmem:[#allocation3 + $0xc4] ss:$8 sps:$4 sm:$0xff]   ;;  %v1760_v51 = vld [vmem:[#allocation3 + $0xc0] ss:$8 sps:$4 sm:$0xff]   ;;  %v1761_v52 = vld [vmem:[#allocation3 + $0xd4] ss:$8 sps:$4 sm:$0xff]  }
  0x54   : > { %v744_v40 = vor.u32 %v743_v36, %v739_v35  ;;  %v1763_v53 = vld [vmem:[#allocation3 + $0xd0] ss:$8 sps:$4 sm:$0xff]   ;;  %v1764_v54 = vld [vmem:[#allocation3 + $0xe4] ss:$8 sps:$4 sm:$0xff]   ;;  %v1766_v55 = vld [vmem:[#allocation3 + $0xe0] ss:$8 sps:$4 sm:$0xff]   ;;  %v387_v35 = vlaneseq }
  0x55   : > { %657 = vmatpush1.bf16.msra.mxu0 %v2127_v19  ;;  %v1767_v56 = vld [vmem:[#allocation3 + $0xf4] ss:$8 sps:$4 sm:$0xff]   ;;  %v1769_v57 = vld [vmem:[#allocation3 + $0xf0] ss:$8 sps:$4 sm:$0xff]   ;;  %v1775_v59 = vld [vmem:[#allocation5 + $0x84] ss:$8 sps:$4 sm:$0xff]  }
  0x56   : > { %755 = vmatpush1.bf16.msra.mxu1 %v2129_v20  ;;  %658 = vmatprep.subr.bf16.mxu0 %v2133_v21  ;;  %v1773_v60 = vld [vmem:[#allocation5 + $0x80] ss:$8 sps:$4 sm:$0xff]   ;;  %v1778_v61 = vld [vmem:[#allocation5 + $0x94] ss:$8 sps:$4 sm:$0xff]   ;;  %v1776_v62 = vld [vmem:[#allocation5 + $0x90] ss:$8 sps:$4 sm:$0xff]  }
  0x57   : > { %756 = vmatprep.subr.bf16.mxu1 %v2138_v22  ;;  %v1781_v63 = vld [vmem:[#allocation5 + $0xa4] ss:$8 sps:$4 sm:$0xff]   ;;  %vm842_vm1 = vsmask.f32 256  ;;  %v1815_v27 = vld [vmem:[#allocation5 + $0x60] ss:$8 sps:$4 sm:$0xff]  }
  0x58   : > { %vm843_vm2 = vmand %vm841_vm0, %vm842_vm1  ;;  %v1823_v30 = vld [vmem:[#allocation5 + $0x104] ss:$8 sps:$4 sm:$0xff]   ;;  %v2223_v36 = vshrl.u32 %v387_v35, 7  ;;  %vm859_vm4 = vsmask.f32 3330  ;;  %v1846_v35 = vld [vmem:[%s2285_s6] sm:$0xff]  }
  0x59   : > { %659 = vmatpush1.bf16.msra.mxu0 %v2140_v23  ;;  %vm860_vm5 = vmand %vm858_vm3, %vm859_vm4 }
  0x5a   : > { %757 = vmatpush1.bf16.msra.mxu1 %v2149_v24  ;;  %660 = vmatprep.subr.bf16.mxu0 %v2151_v25 }
  0x5b   : > { %758 = vmatprep.subr.bf16.mxu1 %v2155_v26 }
  0x5d   : > { %661 = vmatpush1.bf16.msra.mxu0 %v2158_v28 }
  0x5e   : > { %759 = vmatpush1.bf16.msra.mxu1 %v2164_v31  ;;  %662 = vmatprep.subr.bf16.mxu0 %v2168_v32 }
  0x5f   : > { %760 = vmatprep.subr.bf16.mxu1 %v2170_v33 }
  0x61   : > { %663 = vmatpush1.bf16.msra.mxu0 %v1743_v37 }
  0x62   : > { %761 = vmatpush1.bf16.msra.mxu1 %v2176_v38  ;;  %664 = vmatprep.subr.bf16.mxu0 %v1745_v39 }
  0x63   : > { %790 = vmatprep.subr.bf16.mxu1 %v2073_v1  ;;  %v1779_v1 = vld [vmem:[#allocation5 + $0xa0] ss:$8 sps:$4 sm:$0xff]  }
  0x65   : > { %779 = vmatmul.mubr.bf16.vlgmr.msra.gmra.mrb[0].mxu1 %v744_v40  ;;  %665 = vmatpush1.bf16.msra.mxu0 %v1748_v41 }
  0x66   : > { %791 = vmatpush1.bf16.msra.mxu1 %v2078_v3  ;;  %666 = vmatprep.subr.bf16.mxu0 %v1749_v42  ;;  %v1782_v3 = vld [vmem:[#allocation5 + $0xb0] ss:$8 sps:$4 sm:$0xff]  }
  0x67   : > { %792 = vmatprep.subr.bf16.mxu1 %v2083_v5  ;;  %822 = vmatprep.mubr.bf16.mxu1 %v1564_v45  ;;  %v1790_v5 = vld [vmem:[#allocation5 + $0xc4] ss:$8 sps:$4 sm:$0xff]  }
  0x69   : > { %667 = vmatpush1.bf16.msra.mxu0 %v1751_v44 }
  0x6a   : > { %793 = vmatpush1.bf16.msra.mxu1 %v2089_v7  ;;  %668 = vmatprep.subr.bf16.mxu0 %v1752_v46  ;;  %v1788_v7 = vld [vmem:[#allocation5 + $0xc0] ss:$8 sps:$4 sm:$0xff]  }
  0x6b   : > { %794 = vmatprep.subr.bf16.mxu1 %v2095_v9  ;;  %v1796_v9 = vld [vmem:[#allocation5 + $0xd4] ss:$8 sps:$4 sm:$0xff]  }
  0x6d   : > { %669 = vmatpush1.bf16.msra.mxu0 %v1754_v47 }
  0x6e   : > { %795 = vmatpush1.bf16.msra.mxu1 %v2099_v11  ;;  %670 = vmatprep.subr.bf16.mxu0 %v1755_v48  ;;  %v1794_v11 = vld [vmem:[#allocation5 + $0xd0] ss:$8 sps:$4 sm:$0xff]  }
  0x6f   : > { %796 = vmatprep.subr.bf16.mxu1 %v2105_v13  ;;  %v1802_v13 = vld [vmem:[#allocation5 + $0xe4] ss:$8 sps:$4 sm:$0xff]  }
  0x71   : > { %671 = vmatpush1.bf16.msra.mxu0 %v1757_v49 }
  0x72   : > { %797 = vmatpush1.bf16.msra.mxu1 %v2112_v15  ;;  %672 = vmatprep.subr.bf16.mxu0 %v1758_v50  ;;  %v1800_v15 = vld [vmem:[#allocation5 + $0xe0] ss:$8 sps:$4 sm:$0xff]  }
  0x73   : > { %798 = vmatprep.subr.bf16.mxu1 %v2118_v17  ;;  %v1808_v17 = vld [vmem:[#allocation5 + $0xf4] ss:$8 sps:$4 sm:$0xff]  }
  0x75   : > { %673 = vmatpush1.bf16.msra.mxu0 %v1760_v51 }
  0x76   : > { %799 = vmatpush1.bf16.msra.mxu1 %v2127_v19  ;;  %674 = vmatprep.subr.bf16.mxu0 %v1761_v52  ;;  %v1806_v19 = vld [vmem:[#allocation5 + $0xf0] ss:$8 sps:$4 sm:$0xff]  }
  0x77   : > { %800 = vmatprep.subr.bf16.mxu1 %v2133_v21  ;;  %v1811_v21 = vld [vmem:[#allocation5 + $0x44] ss:$8 sps:$4 sm:$0xff]  }
  0x79   : > { %675 = vmatpush1.bf16.msra.mxu0 %v1763_v53 }
  0x7a   : > { %801 = vmatpush1.bf16.msra.mxu1 %v2140_v23  ;;  %676 = vmatprep.subr.bf16.mxu0 %v1764_v54  ;;  %v1809_v23 = vld [vmem:[#allocation5 + $0x40] ss:$8 sps:$4 sm:$0xff]  }
  0x7b   : > { %802 = vmatprep.subr.bf16.mxu1 %v2151_v25  ;;  %v1812_v25 = vld [vmem:[#allocation5 + $0x50] ss:$8 sps:$4 sm:$0xff]  }
  0x7d   : > { %677 = vmatpush1.bf16.msra.mxu0 %v1766_v55 }
  0x7e   : > { %803 = vmatpush1.bf16.msra.mxu1 %v2158_v28  ;;  %678 = vmatprep.subr.bf16.mxu0 %v1767_v56  ;;  %v1818_v28 = vld [vmem:[#allocation5 + $0x70] ss:$8 sps:$4 sm:$0xff]  }
  0x7f   : > { %804 = vmatprep.subr.bf16.mxu1 %v2168_v32 }
  0x81   : > { %679 = vmatpush1.bf16.msra.mxu0 %v1769_v57 }
  0x82   : > { %805 = vmatpush1.bf16.msra.mxu1 %v1743_v37  ;;  %689 = vmatprep.subr.bf16.mxu0 %v2075_v2  ;;  %v1784_v2 = vld [vmem:[#allocation5 + $0xb4] ss:$8 sps:$4 sm:$0xff]   ;;  %v393_v37 = vsub.s32 1, %v2223_v36 }
  0x83   : > { %806 = vmatprep.subr.bf16.mxu1 %v1745_v39 }
  0x84   : > { %681 = vmatmul.mubr.bf16.vlgmr.msra.gmra.mrb[0].mxu0 %v2160_v29  ;;  %v1820_v29 = vld [vmem:[#allocation5 + $0x74] ss:$8 sps:$4 sm:$0xff]  }
  0x85   : > { %690 = vmatpush1.bf16.msra.mxu0 %v2080_v4  ;;  %721 = vmatprep.mubr.bf16.mxu0 %v1942_v0  ;;  %v1787_v4 = vld [vmem:[#allocation5 + $0x4] ss:$8 sps:$4 sm:$0xff]  }
  0x86   : > { %807 = vmatpush1.bf16.msra.mxu1 %v1748_v41  ;;  %691 = vmatprep.subr.bf16.mxu0 %v2087_v6  ;;  %v1785_v6 = vld [vmem:[#allocation5] ss:$8 sps:$4 sm:$0xff]  }
  0x87   : > { %808 = vmatprep.subr.bf16.mxu1 %v1749_v42 }
  0x89   : > { %692 = vmatpush1.bf16.msra.mxu0 %v2092_v8  ;;  %v1793_v8 = vld [vmem:[#allocation5 + $0x14] ss:$8 sps:$4 sm:$0xff]  }
  0x8a   : > { %809 = vmatpush1.bf16.msra.mxu1 %v1751_v44  ;;  %693 = vmatprep.subr.bf16.mxu0 %v2097_v10  ;;  %v1791_v10 = vld [vmem:[#allocation5 + $0x10] ss:$8 sps:$4 sm:$0xff]  }
  0x8b   : > { %810 = vmatprep.subr.bf16.mxu1 %v1752_v46 }
  0x8d   : > { %694 = vmatpush1.bf16.msra.mxu0 %v2101_v12  ;;  %v1799_v12 = vld [vmem:[#allocation5 + $0x24] ss:$8 sps:$4 sm:$0xff]  }
  0x8e   : > { %811 = vmatpush1.bf16.msra.mxu1 %v1754_v47  ;;  %695 = vmatprep.subr.bf16.mxu0 %v2110_v14  ;;  %v1797_v14 = vld [vmem:[#allocation5 + $0x20] ss:$8 sps:$4 sm:$0xff]  }
  0x8f   : > { %812 = vmatprep.subr.bf16.mxu1 %v1755_v48 }
  0x91   : > { %696 = vmatpush1.bf16.msra.mxu0 %v2116_v16  ;;  %v1805_v16 = vld [vmem:[#allocation5 + $0x34] ss:$8 sps:$4 sm:$0xff]  }
  0x92   : > { %813 = vmatpush1.bf16.msra.mxu1 %v1757_v49  ;;  %697 = vmatprep.subr.bf16.mxu0 %v2125_v18  ;;  %v1803_v18 = vld [vmem:[#allocation5 + $0x30] ss:$8 sps:$4 sm:$0xff]  }
  0x93   : > { %814 = vmatprep.subr.bf16.mxu1 %v1758_v50 }
  0x95   : > { %698 = vmatpush1.bf16.msra.mxu0 %v2129_v20  ;;  %v844_v20 = vld [vmem:[#allocation2] sm:$0x1] }
  0x96   : > { %815 = vmatpush1.bf16.msra.mxu1 %v1760_v51  ;;  %699 = vmatprep.subr.bf16.mxu0 %v2138_v22  ;;  %v845_v22 = vsel %vm843_vm2, 0, %v844_v20  ;;  %v1827_v20 = vld [vmem:[#allocation5 + $0x120] ss:$8 sps:$4 sm:$0xff]  }
  0x97   : > { %816 = vmatprep.subr.bf16.mxu1 %v1761_v52  ;;  %846 = vst [vmem:[#allocation2] sm:$0x1] %v845_v22  ;;  %v1830_v22 = vld [vmem:[#allocation5 + $0x130] ss:$8 sps:$4 sm:$0xff]  }
  0x99   : > { %700 = vmatpush1.bf16.msra.mxu0 %v2149_v24  ;;  %v1814_v24 = vld [vmem:[#allocation5 + $0x54] ss:$8 sps:$4 sm:$0xff]  }
  0x9a   : > { %817 = vmatpush1.bf16.msra.mxu1 %v1763_v53  ;;  %701 = vmatprep.subr.bf16.mxu0 %v2155_v26  ;;  %v1817_v26 = vld [vmem:[#allocation5 + $0x64] ss:$8 sps:$4 sm:$0xff]  }
  0x9b   : > { %818 = vmatprep.subr.bf16.mxu1 %v1764_v54 }
  0x9d   : > { %702 = vmatpush1.bf16.msra.mxu0 %v2164_v31 }
  0x9e   : > { %819 = vmatpush1.bf16.msra.mxu1 %v1766_v55  ;;  %703 = vmatprep.subr.bf16.mxu0 %v2170_v33 }
  0x9f   : > { %820 = vmatprep.subr.bf16.mxu1 %v1767_v56 }
  0xa1   : > { %704 = vmatpush1.bf16.msra.mxu0 %v2176_v38  ;;  %v385_v38 = vld [vmem:[%s2281_s2] sm:$0x3] }
  0xa2   : > { %821 = vmatpush1.bf16.msra.mxu1 %v1769_v57  ;;  %993 = vmatprep.subr.bf16.mxu0 %v1787_v4  ;;  %v394_v39 = vrot.slane %v385_v38, %v393_v37 }
  0xa3   : > { %1114 = vmatprep.subr.bf16.mxu1 %v1775_v59 }
  0xa4   : > { %722 = vmatmul.mubr.bf16.vlgmr.msra.gmra.mrb[0].mxu0 %v1515_v58 }
  0xa5   : > { %823 = vmatmul.mubr.bf16.vlgmr.msra.gmra.mrb[4].mxu1 %v1515_v58  ;;  %1025 = vmatprep.mubr.bf16.mxu0 %v1942_v0 }
  0xa6   : > { %1146 = vmatprep.mubr.bf16.mxu1 %v1942_v0  ;;  %1115 = vmatpush1.bf16.msra.mxu1 %v1773_v60 }
  0xa7   : > { %1116 = vmatprep.subr.bf16.mxu1 %v1778_v61  ;;  %994 = vmatpush1.bf16.msra.mxu0 %v1785_v6 }
  0xa8   : > { %995 = vmatprep.subr.bf16.mxu0 %v1793_v8 }
  0xaa   : > { %1117 = vmatpush1.bf16.msra.mxu1 %v1776_v62  ;;  %v389_v62 = vsub.s32 0, %v2223_v36 }
  0xab   : > { %1118 = vmatprep.subr.bf16.mxu1 %v1781_v63  ;;  %996 = vmatpush1.bf16.msra.mxu0 %v1791_v10 }
  0xac   : > { %997 = vmatprep.subr.bf16.mxu0 %v1799_v12  ;;  %v390_v63 = vrot.slane %v385_v38, %v389_v62  ;;  %v861_v12 = vld [vmem:[#allocation2] sm:$0xf]  ;;  %v1943_v38 = vmov 0.0  }
  0xae   : > { %1119 = vmatpush1.bf16.msra.mxu1 %v1779_v1 }
  0xaf   : > { %1120 = vmatprep.subr.bf16.mxu1 %v1784_v2  ;;  %998 = vmatpush1.bf16.msra.mxu0 %v1797_v14 }
  0xb0   : > { %999 = vmatprep.subr.bf16.mxu0 %v1805_v16  ;;  %v1826_v16 = vld [vmem:[#allocation5 + $0x114] ss:$8 sps:$4 sm:$0xff]  }
  0xb2   : > { %1121 = vmatpush1.bf16.msra.mxu1 %v1782_v3 }
  0xb3   : > { %1122 = vmatprep.subr.bf16.mxu1 %v1790_v5  ;;  %1000 = vmatpush1.bf16.msra.mxu0 %v1803_v18  ;;  %v1824_v18 = vld [vmem:[#allocation5 + $0x110] ss:$8 sps:$4 sm:$0xff]  }
  0xb4   : > { %1001 = vmatprep.subr.bf16.mxu0 %v1811_v21  ;;  %v1832_v21 = vld [vmem:[#allocation5 + $0x134] ss:$8 sps:$4 sm:$0xff]  }
  0xb6   : > { %1123 = vmatpush1.bf16.msra.mxu1 %v1788_v7 }
  0xb7   : > { %1124 = vmatprep.subr.bf16.mxu1 %v1796_v9  ;;  %1002 = vmatpush1.bf16.msra.mxu0 %v1809_v23  ;;  %v1835_v23 = vld [vmem:[#allocation5 + $0x144] ss:$8 sps:$4 sm:$0xff]  }
  0xb8   : > { %1003 = vmatprep.subr.bf16.mxu0 %v1814_v24  ;;  %v1833_v24 = vld [vmem:[#allocation5 + $0x140] ss:$8 sps:$4 sm:$0xff]  }
  0xba   : > { %1125 = vmatpush1.bf16.msra.mxu1 %v1794_v11 }
  0xbb   : > { %1126 = vmatprep.subr.bf16.mxu1 %v1802_v13  ;;  %1004 = vmatpush1.bf16.msra.mxu0 %v1812_v25  ;;  %v1838_v25 = vld [vmem:[#allocation5 + $0x154] ss:$8 sps:$4 sm:$0xff]  }
  0xbc   : > { %1005 = vmatprep.subr.bf16.mxu0 %v1817_v26  ;;  %v1836_v26 = vld [vmem:[#allocation5 + $0x150] ss:$8 sps:$4 sm:$0xff]  }
  0xbe   : > { %1127 = vmatpush1.bf16.msra.mxu1 %v1800_v15  ;;  %v1821_v15 = vld [vmem:[#allocation5 + $0x100] ss:$8 sps:$4 sm:$0xff]  }
  0xbf   : > { %1128 = vmatprep.subr.bf16.mxu1 %v1808_v17  ;;  %1006 = vmatpush1.bf16.msra.mxu0 %v1815_v27  ;;  %v1841_v27 = vld [vmem:[#allocation5 + $0x164] ss:$8 sps:$4 sm:$0xff]  }
  0xc0   : > { %1007 = vmatprep.subr.bf16.mxu0 %v1820_v29  ;;  %v1844_v29 = vld [vmem:[#allocation5 + $0x174] ss:$8 sps:$4 sm:$0xff]  }
  0xc2   : > { %1129 = vmatpush1.bf16.msra.mxu1 %v1806_v19  ;;  %v1829_v19 = vld [vmem:[#allocation5 + $0x124] ss:$8 sps:$4 sm:$0xff]  }
  0xc3   : > { %1008 = vmatpush1.bf16.msra.mxu0 %v1818_v28  ;;  %1637 = vmatprep.subr.bf16.mxu1 %v1943_v38 }
  0xc4   : > { %1247 = vmatprep.subr.bf16.mxu0 %v1823_v30 }
 0x138   : > { %v780_v31 = vpop.f32.mrb[0].mxu1 }
 0x139   : > { %v782_v32 = vpop.f32.mrb[1].mxu1 }
 0x13a   : > { %v784_v33 = vpop.f32.mrb[2].mxu1 }
 0x13b   : > { %v785_v34 = vpop.f32.mrb[3].mxu1 }
 0x177   : > { %v723_v40 = vpop.f32.mrb[0].mxu0 }
 0x178   : > { %v824_v41 = vpop.f32.mrb[4].mxu1  ;;  %v725_v43 = vpop.f32.mrb[1].mxu0  ;;  %v1657_v1 = vadd.f32 %v723_v40, %v390_v63  ;;  %v1848_v40 = vld [vmem:[%s2285_s6 + $0x10] sm:$0xff]  }
 0x179   : > { %v825_v42 = vadd.f32 %v824_v41, %v780_v31  ;;  %v826_v44 = vpop.f32.mrb[5].mxu1  ;;  %v1658_v45 = vadd.f32 %v725_v43, %v394_v39  ;;  %v727_v48 = vpop.f32.mrb[2].mxu0  ;;  %v1842_v31 = vld [vmem:[#allocation5 + $0x170] ss:$8 sps:$4 sm:$0xff]   ;;  %v1851_v43 = vld [vmem:[%s2285_s6 + $0x28] sm:$0xff]  }
 0x17a   : > { %v827_v46 = vadd.f32 %v826_v44, %v782_v32  ;;  %v828_v47 = vpop.f32.mrb[6].mxu1  ;;  %v728_v50 = vpop.f32.mrb[3].mxu0  ;;  %v1849_v41 = vld [vmem:[%s2285_s6 + $0x18] sm:$0xff]   ;;  %v1852_v44 = vld [vmem:[%s2285_s6 + $0x30] sm:$0xff]  }
 0x17b   : > { %v829_v49 = vpop.f32.mrb[7].mxu1  ;;  %v730_v51 = vmax.f32 %v1658_v45, -30.0  ;;  %v831_v3 = vadd.f32 %v825_v42, %v390_v63  ;;  %v1850_v42 = vld [vmem:[%s2285_s6 + $0x20] sm:$0xff]   ;;  %v1853_v45 = vld [vmem:[%s2285_s6 + $0x38] sm:$0xff]  }
 0x17c   : > { %v832_v52 = vadd.f32 %v827_v46, %v394_v39  ;;  %v1847_v39 = vld [vmem:[%s2285_s6 + $0x8] sm:$0xff]  }
 0x17d   : > { %v731_v53 = vsub.f32 0.0, %v730_v51 }
 0x17e   : > { %v833_v54 = vmax.f32 %v832_v52, -30.0 }
 0x17f   : > { %v732_v55 = vmul.f32 1.442695, %v731_v53 }
 0x180   : > { %v834_v56 = vsub.f32 0.0, %v833_v54 }
 0x181   : > { %1854 = vpow2.f32 %v732_v55 }
 0x182   : > { %v835_v57 = vmul.f32 1.442695, %v834_v56  ;;  %v1290_v56 = vld [vmem:[%s2283_s4] sm:$0x3] }
 0x184   : > { %1856 = vpow2.f32 %v835_v57 }
 0x18b   : > { %v1855_v58 = vpop.eup %1854 }
 0x18c   : > { %v734_v59 = vadd.f32 1.0, %v1855_v58  ;;  %v1299_v58 = vrot.slane %v1290_v56, %v393_v37  ;;  %v1311_v37 = vld [vmem:[%s2284_s5] sm:$0x3f] }
 0x18e   : > { %v1857_v60 = vpop.eup %1856  ;;  %1858 = vrcp.f32 %v734_v59 }
 0x18f   : > { %v837_v61 = vadd.f32 1.0, %v1857_v60 }
 0x191   : > { %1860 = vrcp.f32 %v837_v61 }
 0x198   : > { %v1859_v2 = vpop.eup %1858 }
 0x199   : > { %v736_v4 = vmul.f32 %v1859_v2, %v1657_v1 }
 0x19b   : > { %v1861_v5 = vpop.eup %1860  ;;  %v737_v7 = vpack.c.bf16 %v736_v4, %v736_v4 }
 0x19c   : > { %v839_v6 = vmul.f32 %v1861_v5, %v831_v3 }
 0x19d   : > { %1147 = vmatmul.mubr.bf16.vlgmr.msra.gmra.mrb[8].mxu1 %v737_v7 }
 0x19e   : > { %v1627_v8 = vpack.c.bf16 %v839_v6, %v839_v6  ;;  %1638 = vmatpush3.bf16.msra.mxu1 %v1846_v35  ;;  %1653 = vmatprep.mubr.msk.bf16.mxu1 %vm1944_vm6, %v1943_v38 }
 0x19f   : > { %1639 = vmatprep.subr.bf16.mxu1 %v1943_v38 }
 0x1a0   : > { %v851_v9 = vshrl.u32 %v1627_v8, 16  ;;  %v854_v11 = vshll.u32 %v1627_v8, 16  ;;  %v1295_v8 = vrot.slane %v1290_v56, %v389_v62 }
 0x1a2   : > { %v853_v10 = vrot.slane %v851_v9, 7  ;;  %1640 = vmatpush3.bf16.msra.mxu1 %v1847_v39 }
 0x1a3   : > { %1641 = vmatprep.subr.bf16.mxu1 %v1943_v38 }
 0x1a4   : > { %v856_v13 = vor.u32 %v854_v11, %v853_v10 }
 0x1a6   : > { %v862_v14 = vsel %vm860_vm5, %v856_v13, %v861_v12  ;;  %1642 = vmatpush3.bf16.msra.mxu1 %v1848_v40 }
 0x1a7   : > { %863 = vst [vmem:[#allocation2] sm:$0xf] %v862_v14  ;;  %1643 = vmatprep.subr.bf16.mxu1 %v1943_v38  ;;  %v1615_v14 = vld [vmem:[%s2286_s7] ss:$0 sm:$0xff] }
 0x1aa   : > { %1644 = vmatpush3.bf16.msra.mxu1 %v1849_v41 }
 0x1ab   : > { %1645 = vmatprep.subr.bf16.mxu1 %v1943_v38 }
 0x1ae   : > { %v912_v17 = vld [vmem:[#allocation2] sm:$0x7]  ;;  %1646 = vmatpush3.bf16.msra.mxu1 %v1850_v42 }
 0x1af   : > { %1026 = vmatmul.mubr.bf16.vlgmr.msra.gmra.mrb[4].mxu0 %v912_v17  ;;  %v1845_v28 = vld [vmem:[#allocation2] ss:$0 sps:$4 sm:$0xff]   ;;  %1647 = vmatprep.subr.bf16.mxu1 %v1943_v38 }
 0x1b0   : > { %1248 = vmatpush1.bf16.msra.mxu0 %v1821_v15  ;;  %1279 = vmatprep.mubr.bf16.mxu0 %v1942_v0  ;;  %v1839_v0 = vld [vmem:[#allocation5 + $0x160] ss:$8 sps:$4 sm:$0xff]   ;;  %v1162_v30 = vshll.u32 %v1845_v28, 16  ;;  %v1160_v33 = vshrl.u32 %v1845_v28, 16 }
 0x1b1   : > { %1249 = vmatprep.subr.bf16.mxu0 %v1826_v16 }
 0x1b2   : > { %v1164_v32 = vrot.slane %v1162_v30, 1  ;;  %1648 = vmatpush3.bf16.msra.mxu1 %v1851_v43 }
 0x1b3   : > { %1649 = vmatprep.subr.bf16.mxu1 %v1943_v38 }
 0x1b4   : > { %1250 = vmatpush1.bf16.msra.mxu0 %v1824_v18  ;;  %v1165_v34 = vor.u32 %v1164_v32, %v1160_v33 }
 0x1b5   : > { %1251 = vmatprep.subr.bf16.mxu0 %v1829_v19 }
 0x1b6   : > { %1650 = vmatpush3.bf16.msra.mxu1 %v1852_v44 }
 0x1b7   : > { %1651 = vmatprep.subr.bf16.mxu1 %v1943_v38 }
 0x1b8   : > { %1252 = vmatpush1.bf16.msra.mxu0 %v1827_v20 }
 0x1b9   : > { %1253 = vmatprep.subr.bf16.mxu0 %v1832_v21 }
 0x1ba   : > { %1652 = vmatpush3.bf16.msra.mxu1 %v1853_v45 }
 0x1bc   : > { %1254 = vmatpush1.bf16.msra.mxu0 %v1830_v22 }
 0x1bd   : > { %1255 = vmatprep.subr.bf16.mxu0 %v1835_v23 }
 0x1c0   : > { %1256 = vmatpush1.bf16.msra.mxu0 %v1833_v24 }
 0x1c1   : > { %1257 = vmatprep.subr.bf16.mxu0 %v1838_v25 }
 0x1c4   : > { %1258 = vmatpush1.bf16.msra.mxu0 %v1836_v26 }
 0x1c5   : > { %1259 = vmatprep.subr.bf16.mxu0 %v1841_v27 }
 0x1c8   : > { %1260 = vmatpush1.bf16.msra.mxu0 %v1839_v0 }
 0x1c9   : > { %1261 = vmatprep.subr.bf16.mxu0 %v1844_v29 }
 0x1cc   : > { %1262 = vmatpush1.bf16.msra.mxu0 %v1842_v31 }
 0x1cf   : > { %1280 = vmatmul.mubr.bf16.vlgmr.msra.gmra.mrb[8].mxu0 %v1165_v34 }
 0x270   : > { %v1148_v46 = vpop.f32.mrb[8].mxu1 }
 0x271   : > { %v1150_v47 = vpop.f32.mrb[9].mxu1 }
 0x272   : > { %v1152_v48 = vpop.f32.mrb[10].mxu1 }
 0x273   : > { %v1153_v49 = vpop.f32.mrb[11].mxu1 }
 0x282   : > { %v1027_v50 = vpop.f32.mrb[4].mxu0 }
 0x283   : > { %v1149_v51 = vadd.f32 %v1148_v46, %v1027_v50  ;;  %v1029_v52 = vpop.f32.mrb[5].mxu0 }
 0x284   : > { %v1151_v53 = vadd.f32 %v1150_v47, %v1029_v52  ;;  %v1031_v54 = vpop.f32.mrb[6].mxu0 }
 0x285   : > { %v1032_v55 = vpop.f32.mrb[7].mxu0 }
 0x2a2   : > { %v1281_v57 = vpop.f32.mrb[8].mxu0 }
 0x2a3   : > { %v1288_v59 = vadd.f32 %v1281_v57, %v1149_v51  ;;  %v1283_v60 = vpop.f32.mrb[9].mxu0 }
 0x2a4   : > { %v1289_v61 = vadd.f32 %v1283_v60, %v1151_v53  ;;  %v1285_v63 = vpop.f32.mrb[10].mxu0 }
 0x2a5   : > { %v1286_v1 = vpop.f32.mrb[11].mxu0  ;;  %v1302_v9 = vadd.f32 %v1295_v8, %v1288_v59 }
 0x2a6   : > { %v1303_v2 = vadd.f32 %v1299_v58, %v1289_v61 }
 0x2a8   : > { %v1304_v3 = vmax.f32 %v1303_v2, -30.0 }
 0x2aa   : > { %v1305_v4 = vsub.f32 0.0, %v1304_v3 }
 0x2ac   : > { %v1306_v5 = vmul.f32 1.442695, %v1305_v4 }
 0x2ae   : > { %1862 = vpow2.f32 %v1306_v5 }
 0x2b8   : > { %v1863_v6 = vpop.eup %1862 }
 0x2b9   : > { %v1308_v7 = vadd.f32 1.0, %v1863_v6 }
 0x2bb   : > { %1864 = vrcp.f32 %v1308_v7 }
 0x2c5   : > { %v1865_v10 = vpop.eup %1864 }
 0x2c6   : > { %v1310_v11 = vmul.f32 %v1865_v10, %v1302_v9 }
 0x2c8   : > { %v1312_v12 = vadd.f32 %v1311_v37, %v1310_v11 }
 0x2ca   : > { %v1313_v13 = vpack.c.bf16 %v1312_v12, %v1312_v12 }
 0x2cc   : > { %1654 = vmatmul.mubr.bf16.vlgmr.msra.gmra.mrb[12].mxu1 %v1313_v13 }
 0x39f   : > { %v1419_v36 = vpop.f32.mrb[12].mxu1 }
 0x3a0   : > { %v1420_v62 = vadd.f32 %v1615_v14, %v1419_v36  ;;  %v1655_v15 = vpop.f32.mrb[13].mxu1 }
 0x3a1   : > { %v1422_v16 = vpop.f32.mrb[14].mxu1 }
 0x3a2   : > { %1425 = vst [vmem:[%s333_s26] sm:$0x3f] %v1420_v62  ;;  %v1656_v17 = vpop.f32.mrb[15].mxu1 }
 0x3a3 PF: > { %s20_s27 = sadd.s32 1, %s1936_s27  }
 0x3a4   : > { %p17_p9 = scmp.ge.s32.totalorder %s20_s27, 4  }
 0x3a6   :  { %19 = sbr.rel (!%p17_p9) target bundleno = 2 (0x2), region = 91 }
 0x3ad   :  { %1445 = vsyncpa [#allocation4], 1 }
 0x3ae   :  { %1447 = vsyncpa [#allocation4 + $0x1], 1 }
 0x3af   :  { %1448 = vsyncpa [#allocation6], 1 }

</bundles_post_ra>
